<compile_context>
chip_gen: v7x
topology: tpu7x:2x2x1
jax: 0.10.0
libtpu: 0.0.40
codegen_flags: <defaults>
</compile_context>

<pallas_src>
import math

import jax
import jax.numpy as jnp
from jax.experimental import pallas as pl
from jax.experimental.pallas import tpu as pltpu


def _round_up(v, m):
    return (v + m - 1) // m * m


def _output_attention_kernel(x_ref, w_ref, b_ref, o_ref):
    x = x_ref[...]                     # (Bt, S, H)   VMEM
    w = w_ref[...]                     # (1, H)       VMEM
    bias = b_ref[0]                    # scalar       SMEM (constant over S; kept
                                       # for exact fidelity with the nn.Linear)

    # Linear(H -> 1): VPU multiply + lane (XLU) reduce. keepdims keeps the S
    # axis on sublanes, matching x's layout, so no relayout is needed below.
    s = jnp.sum(x * w[None, :, :], axis=-1, keepdims=True) + bias   # (Bt, S, 1)

    # Numerically-stable softmax over S with deferred normalization.
    m = jnp.max(s, axis=1, keepdims=True)                           # (Bt, 1, 1)
    e = jnp.exp(s - m)                                              # (Bt, S, 1)  EUP
    denom = jnp.sum(e, axis=1, keepdims=True)                       # (Bt, 1, 1)

    # Unnormalized weighted accumulation (sublane reduce over S), then a single
    # per-row rescale: only Bt exact divides instead of a (Bt, S) divide on the
    # critical path before the big multiply.
    acc = jnp.sum(x * e, axis=1)                                    # (Bt, H)
    inv = 1.0 / denom[:, 0, :]                                      # (Bt, 1)
    o_ref[...] = (acc * inv).astype(o_ref.dtype)


def output_attention(x, w, b, *, max_block_batch=4096, vmem_budget_bytes=32 << 20):
    """x: (B, S, H) f32; w: (1, H) Linear weight; b: (1,) Linear bias -> (B, H)."""
    B, S, H = x.shape

    # Budget the batch tile against the *lane-padded* x footprint (H pads to a
    # multiple of 128 lanes, S to a multiple of 8 sublanes), double-buffered
    # plus headroom (factor 4).
    h_pad = _round_up(H, 128)
    s_pad = _round_up(S, 8)
    x_row_bytes = s_pad * h_pad * 4
    bt = max(1, min(B, max_block_batch, vmem_budget_bytes // (4 * x_row_bytes)))
    if bt >= B:
        bt = B
    else:
        # A partial batch tile sits on the output's sublane axis: keep it a
        # multiple of 8 that divides B, else fall back to the whole batch.
        bt = (bt // 8) * 8
        while bt >= 8 and B % bt:
            bt -= 8
        if bt < 8 or B % bt:
            bt = B
    grid = (B // bt,)

    # Explicit scoped-VMEM limit (v5e default is only 16 MiB); capped at 64 MiB
    # so the same setting is safe on v7x (64 MiB physical per TC).
    vmem_limit = int(min(64 << 20, max(32 << 20, 6 * bt * x_row_bytes)))

    return pl.pallas_call(
        _output_attention_kernel,
        out_shape=jax.ShapeDtypeStruct((B, H), jnp.float32),
        grid=grid,
        in_specs=[
            pl.BlockSpec((bt, S, H), lambda i: (i, 0, 0)),          # x batch tile
            pl.BlockSpec((1, H), lambda i: (0, 0)),                 # attn weight
            pl.BlockSpec(memory_space=pltpu.MemorySpace.SMEM),      # bias scalar
        ],
        out_specs=pl.BlockSpec((bt, H), lambda i: (i, 0)),
        compiler_params=pltpu.CompilerParams(
            dimension_semantics=("parallel",),   # lets v7x use both TensorCores
            vmem_limit_bytes=vmem_limit,
        ),
    )(x, w, b)


def reference_jax(x, w, b):
    """Pure-JAX reference mirroring the PyTorch forward."""
    scores = jnp.einsum("bsh,oh->bso", x, w)[..., 0] + b[0]     # (B, S)
    probs = jax.nn.softmax(scores, axis=1)                       # over seq dim
    return jnp.sum(x * probs[:, :, None], axis=1)                # (B, H)


def init_params(key, hidden_dim):
    """nn.Linear(hidden_dim, 1): weight (1, H), bias (1,)."""
    kw, kb = jax.random.split(key)
    bound = 1.0 / math.sqrt(hidden_dim)
    w = jax.random.uniform(kw, (1, hidden_dim), jnp.float32, -bound, bound)
    b = jax.random.uniform(kb, (1,), jnp.float32, -bound, bound)
    return w, b


if __name__ == "__main__":
    B = 16         # batch
    S = 16         # sequence length (softmax axis)
    HIDDEN = 32    # hidden_dim

    key = jax.random.PRNGKey(0)
    k_x, k_p = jax.random.split(key)
    x = jax.random.normal(k_x, (B, S, HIDDEN), jnp.float32)
    w, b = init_params(k_p, HIDDEN)

    ref = reference_jax(x, w, b)

    # Default path: tile selection picks the whole batch -> single block.
    out = jax.block_until_ready(output_attention(x, w, b))
    assert out.shape == (B, HIDDEN), out.shape
    assert jnp.max(jnp.abs(out - ref)) < 1e-4, "mismatch vs pure-JAX reference"

    # Also exercise the batch-tiled ("parallel" grid) production path.
    out_tiled = jax.block_until_ready(output_attention(x, w, b, max_block_batch=8))
    assert jnp.max(jnp.abs(out_tiled - ref)) < 1e-4, "mismatch (tiled path)"

    print("KERNEL_OK")
</pallas_src>

<mosaic_0001>
module attributes {stable_mosaic.version = 11 : i64} {
  func.func @_output_attention_kernel(%arg0: i32, %arg1: memref<16x16x32xf32, #tpu.memory_space<vmem>>, %arg2: memref<1x32xf32, #tpu.memory_space<vmem>>, %arg3: memref<1xf32, #tpu.memory_space<smem>>, %arg4: memref<16x32xf32, #tpu.memory_space<vmem>>) attributes {dimension_semantics = [#tpu.dimension_semantics<parallel>], iteration_bounds = array<i64: 1>, scalar_prefetch = 0 : i64, scratch_operands = 0 : i64, tpu.core_type = #tpu.core_type<tc>, window_params = [{transform_indices = @transform_0, window_bounds = array<i64: 16, 16, 32>}, {pipeline_mode = #tpu.pipeline_mode<synchronous>, transform_indices = @transform_1, window_bounds = array<i64: 1, 32>}, {transform_indices = @transform_2, window_bounds = array<i64: 1>}, {transform_indices = @transform_3, window_bounds = array<i64: 16, 32>}]} {
    %c0 = arith.constant 0 : index
    %c0_0 = arith.constant 0 : index
    %c0_1 = arith.constant 0 : index
    %0 = vector.load %arg1[%c0, %c0_0, %c0_1] : memref<16x16x32xf32, #tpu.memory_space<vmem>>, vector<16x16x32xf32>
    %c0_2 = arith.constant 0 : index
    %c0_3 = arith.constant 0 : index
    %1 = vector.load %arg2[%c0_2, %c0_3] : memref<1x32xf32, #tpu.memory_space<vmem>>, vector<1x32xf32>
    %c0_4 = arith.constant 0 : index
    %2 = memref.load %arg3[%c0_4] : memref<1xf32, #tpu.memory_space<smem>>
    %3 = vector.shape_cast %1 : vector<1x32xf32> to vector<1x1x32xf32>
    %4 = vector.broadcast %3 : vector<1x1x32xf32> to vector<16x16x32xf32>
    %5 = arith.mulf %0, %4 : vector<16x16x32xf32>
    %cst = arith.constant dense<0.000000e+00> : vector<16x16xf32>
    %6 = vector.multi_reduction <add>, %5, %cst [2] : vector<16x16x32xf32> to vector<16x16xf32>
    %7 = vector.shape_cast %6 : vector<16x16xf32> to vector<16x16x1xf32>
    %8 = vector.broadcast %2 : f32 to vector<16x16x1xf32>
    %9 = arith.addf %7, %8 : vector<16x16x1xf32>
    %cst_5 = arith.constant dense<0xFF800000> : vector<16x1xf32>
    %10 = vector.multi_reduction <maximumf>, %9, %cst_5 [1] : vector<16x16x1xf32> to vector<16x1xf32>
    %11 = vector.shape_cast %10 : vector<16x1xf32> to vector<16x1x1xf32>
    %12 = vector.broadcast %11 : vector<16x1x1xf32> to vector<16x16x1xf32>
    %13 = arith.subf %9, %12 : vector<16x16x1xf32>
    %14 = math.exp %13 : vector<16x16x1xf32>
    %cst_6 = arith.constant dense<0.000000e+00> : vector<16x1xf32>
    %15 = vector.multi_reduction <add>, %14, %cst_6 [1] : vector<16x16x1xf32> to vector<16x1xf32>
    %16 = vector.shape_cast %15 : vector<16x1xf32> to vector<16x1x1xf32>
    %17 = vector.broadcast %14 : vector<16x16x1xf32> to vector<16x16x32xf32>
    %18 = arith.mulf %0, %17 : vector<16x16x32xf32>
    %cst_7 = arith.constant dense<0.000000e+00> : vector<16x32xf32>
    %19 = vector.multi_reduction <add>, %18, %cst_7 [1] : vector<16x16x32xf32> to vector<16x32xf32>
    %20 = vector.shape_cast %16 : vector<16x1x1xf32> to vector<16x1xf32>
    %cst_8 = arith.constant 1.000000e+00 : f32
    %21 = vector.broadcast %cst_8 : f32 to vector<16x1xf32>
    %22 = arith.divf %21, %20 : vector<16x1xf32>
    %23 = vector.broadcast %22 : vector<16x1xf32> to vector<16x32xf32>
    %24 = arith.mulf %19, %23 : vector<16x32xf32>
    %c0_9 = arith.constant 0 : index
    %c0_10 = arith.constant 0 : index
    %25 = vector.load %arg4[%c0_9, %c0_10] : memref<16x32xf32, #tpu.memory_space<vmem>>, vector<16x32xf32>
    tpu.vector_store %arg4[%c0_9, %c0_10], %24 {strides = array<i32>} : memref<16x32xf32, #tpu.memory_space<vmem>>, vector<16x32xf32>,
    return
  }
  func.func @transform_0(%arg0: i32) -> (i32, i32, i32) {
    %c0_i32 = arith.constant 0 : i32
    %c0_i32_0 = arith.constant 0 : i32
    %c0_i32_1 = arith.constant 0 : i32
    return %arg0, %c0_i32, %c0_i32_0 : i32, i32, i32
  }
  func.func @transform_1(%arg0: i32) -> (i32, i32) {
    %c0_i32 = arith.constant 0 : i32
    %c0_i32_0 = arith.constant 0 : i32
    %c0_i32_1 = arith.constant 0 : i32
    return %c0_i32, %c0_i32_0 : i32, i32
  }
  func.func @transform_2(%arg0: i32) -> i32 {
    %c0_i32 = arith.constant 0 : i32
    %c0_i32_0 = arith.constant 0 : i32
    return %c0_i32 : i32
  }
  func.func @transform_3(%arg0: i32) -> (i32, i32) {
    %c0_i32 = arith.constant 0 : i32
    %c0_i32_0 = arith.constant 0 : i32
    return %arg0, %c0_i32 : i32, i32
  }
}

</mosaic_0001>

<bundles_post_ra>
// kernel: tpu_custom_call.1
= control target key start
LH: loop header
LB: loop body
LE: loop exit
PB: predicated region body
PF: predicated region fallthrough
CT: control target
= control target key end

     0   :  { %9 = vsyncpa [#allocation4], 0  ;;  %s1500_s0 = inlined_call_operand.hbm [shape: f32[16,16,32], index: 0, kind: input, shape index: {}]   ;;  %s1501_s1 = inlined_call_operand.vmem [shape: f32[1,32], index: 1, kind: input, shape index: {}]   ;;  %s1502_s2 = inlined_call_operand.<no memory space> [shape: f32[1], index: 2, kind: input, shape index: {}]   ;;  %s1503_s3 = inlined_call_operand.hbm [shape: f32[16,32], index: 3, kind: output, shape index: {}]  }
   0x1   :  { %10 = vsyncpa [#allocation5], 0  ;;  %s991_s12 = smov [#allocation3]   ;;  %s943_s16 = scalar_lea.hbm %s1500_s0, 4096 }
   0x2   :  { %s16_s13 = sshll.u32 %s991_s12, 4  ;;  %p944_p0 = scmp.ne.s32.totalorder %s1500_s0, %s943_s16  ;;  %s17_s13 = int_to_ptr.vmem [resolvable:$true] %s16_s13 }
   0x3   :  { %p947_p1 = scmp.lt.u32.totalorder %s943_s16, %s1500_s0 }
   0x5   :  { %p949_p2 = pnand %p947_p1, %p944_p0 }
   0x7   :  { %952 = shalt.err (!%p949_p2)
}
   0x8   :  { %s953_s21 = scalar_lea.vmem %s17_s13, 4096  ;;  %p958_p4 = scmp.lt.s32.totalorder %s17_s13, %s17_s13 }
   0x9   :  { %p954_p3 = scmp.ne.s32.totalorder %s17_s13, %s953_s21  ;;  %p959_p5 = scmp.lt.s32.totalorder %s953_s21, %s953_s21 }
   0xb   :  { %p960_p6 = por %p959_p5, %p958_p4 }
   0xd   :  { %p961_p7 = pnand %p960_p6, %p954_p3 }
   0xf   :  { %964 = shalt.err (!%p961_p7)
}
  0x10   :  { %s992_s22 = smov 128   ;;  %s993_s23 = smov 8  }
  0x11   :  { %22 = dma.hbm_to_vmem [thread:$0]  %s1500_s0, 4096, %s17_s13, [#allocation4], %s992_s22, %s992_s22, %s993_s23  }
  0x12   :  { %987 = dma.done.wait [#allocation4], 4096  }
  0x13   :  { %988 = vsyncadd [#allocation4], 4294963200  ;;  %v1030_v0 = vld [vmem:[#allocation3 + $0x10] sm:$0xff]  ;;  %v1035_v1 = vld [vmem:[%s1501_s1] ss:$0 sm:$0xff]  ;;  %vm102_vm0 = vcmask 261120  }
  0x14   :  { %v1037_v2 = vld [vmem:[#allocation3] sm:$0xff]  ;;  %v72_v3 = vmul.f32 %v1035_v1, %v1030_v0  ;;  %v1043_v5 = vld [vmem:[#allocation3 + $0x18] sm:$0xff]  ;;  %v1045_v6 = vld [vmem:[#allocation3 + $0x8] sm:$0xff]  ;;  %vm792_vm1 = vcmask 1041409   ;;  %vm794_vm2 = vcmask 1042434   ;;  %vm796_vm3 = vcmask 1043459  }
  0x15   :  { %v70_v4 = vmul.f32 %v1035_v1, %v1037_v2  ;;  %v73_v7 = vmul.f32 %v1035_v1, %v1043_v5  ;;  %v71_v8 = vmul.f32 %v1035_v1, %v1045_v6  ;;  %v1051_v9 = vld [vmem:[#allocation3 + $0x88] sm:$0xff]  ;;  %v1053_v10 = vld [vmem:[#allocation3 + $0x80] sm:$0xff]  ;;  %v1063_v17 = vld [vmem:[#allocation3 + $0x98] sm:$0xff]  ;;  %vm798_vm4 = vcmask 1044484  }
  0x16   :  { %v109_v11 = vsel %vm102_vm0, %v72_v3, 0.0  ;;  %v87_v15 = vmul.f32 %v1035_v1, %v1051_v9  ;;  %v86_v16 = vmul.f32 %v1035_v1, %v1053_v10  ;;  %v1065_v18 = vld [vmem:[#allocation3 + $0x90] sm:$0xff]  ;;  %v89_v21 = vmul.f32 %v1035_v1, %v1063_v17  ;;  %v1073_v23 = vld [vmem:[#allocation3 + $0x28] sm:$0xff]  ;;  %v1075_v24 = vld [vmem:[#allocation3 + $0x20] sm:$0xff] }
  0x17   :  { %v103_v12 = vsel %vm102_vm0, %v70_v4, 0.0  ;;  %110 = vadd.xlane.f32.xlu1 %v109_v11  ;;  %v112_v13 = vsel %vm102_vm0, %v73_v7, 0.0  ;;  %v106_v14 = vsel %vm102_vm0, %v71_v8, 0.0  ;;  %v88_v22 = vmul.f32 %v1035_v1, %v1065_v18  ;;  %v1083_v29 = vld [vmem:[#allocation3 + $0xa8] sm:$0xff]  ;;  %v1085_v30 = vld [vmem:[#allocation3 + $0xa0] sm:$0xff]  ;;  %v1093_v35 = vld [vmem:[#allocation3 + $0x38] sm:$0xff] }
  0x18   :  { %104 = vadd.xlane.f32.xlu0 %v103_v12  ;;  %v154_v19 = vsel %vm102_vm0, %v87_v15, 0.0  ;;  %v151_v20 = vsel %vm102_vm0, %v86_v16, 0.0  ;;  %v160_v25 = vsel %vm102_vm0, %v89_v21, 0.0  ;;  %v75_v27 = vmul.f32 %v1035_v1, %v1073_v23  ;;  %v1095_v36 = vld [vmem:[#allocation3 + $0x30] sm:$0xff]  ;;  %v1103_v41 = vld [vmem:[#allocation3 + $0xb8] sm:$0xff]  ;;  %v1113_v47 = vld [vmem:[#allocation3 + $0x48] sm:$0xff] }
  0x19   :  { %v157_v26 = vsel %vm102_vm0, %v88_v22, 0.0  ;;  %v74_v28 = vmul.f32 %v1035_v1, %v1075_v24  ;;  %v91_v33 = vmul.f32 %v1035_v1, %v1083_v29  ;;  %v90_v34 = vmul.f32 %v1035_v1, %v1085_v30  ;;  %v1105_v42 = vld [vmem:[#allocation3 + $0xb0] sm:$0xff]  ;;  %v1115_v48 = vld [vmem:[#allocation3 + $0x40] sm:$0xff]  ;;  %v1123_v53 = vld [vmem:[#allocation3 + $0xc8] sm:$0xff] }
  0x1a   :  { %v118_v31 = vsel %vm102_vm0, %v75_v27, 0.0  ;;  %v77_v39 = vmul.f32 %v1035_v1, %v1093_v35  ;;  %v76_v40 = vmul.f32 %v1035_v1, %v1095_v36  ;;  %v93_v45 = vmul.f32 %v1035_v1, %v1103_v41  ;;  %v1125_v54 = vld [vmem:[#allocation3 + $0xc0] sm:$0xff]  ;;  %v1133_v59 = vld [vmem:[#allocation3 + $0x58] sm:$0xff]  ;;  %v1135_v60 = vld [vmem:[#allocation3 + $0x50] sm:$0xff] }
  0x1b   :  { %113 = vadd.xlane.f32.xlu1 %v112_v13  ;;  %v115_v32 = vsel %vm102_vm0, %v74_v28, 0.0  ;;  %v166_v37 = vsel %vm102_vm0, %v91_v33, 0.0  ;;  %v163_v38 = vsel %vm102_vm0, %v90_v34, 0.0  ;;  %v92_v46 = vmul.f32 %v1035_v1, %v1105_v42  ;;  %v57_v4 = vld [vmem:[#allocation3 + $0xd8] sm:$0xff]  ;;  %v56_v7 = vld [vmem:[#allocation3 + $0xd0] sm:$0xff]  ;;  %v1149_v15 = vld [vmem:[#allocation3 + $0x60] sm:$0xff] }
  0x1c   :  { %107 = vadd.xlane.f32.xlu0 %v106_v14  ;;  %v124_v43 = vsel %vm102_vm0, %v77_v39, 0.0  ;;  %v121_v44 = vsel %vm102_vm0, %v76_v40, 0.0  ;;  %v172_v49 = vsel %vm102_vm0, %v93_v45, 0.0  ;;  %v79_v51 = vmul.f32 %v1035_v1, %v1113_v47  ;;  %v1147_v14 = vld [vmem:[#allocation3 + $0x68] sm:$0xff]  ;;  %v44_v33 = vld [vmem:[#allocation3 + $0x70] sm:$0xff]  ;;  %v61_v40 = vld [vmem:[#allocation3 + $0xf8] sm:$0xff] }
  0x1d   :  { %v169_v50 = vsel %vm102_vm0, %v92_v46, 0.0  ;;  %v78_v52 = vmul.f32 %v1035_v1, %v1115_v48  ;;  %v95_v57 = vmul.f32 %v1035_v1, %v1123_v53  ;;  %v94_v58 = vmul.f32 %v1035_v1, %v1125_v54  ;;  %v59_v22 = vld [vmem:[#allocation3 + $0xe8] sm:$0xff] }
  0x1e   :  { %v130_v55 = vsel %vm102_vm0, %v79_v51, 0.0  ;;  %v81_v63 = vmul.f32 %v1035_v1, %v1133_v59  ;;  %v80_v3 = vmul.f32 %v1035_v1, %v1135_v60  ;;  %v97_v12 = vmul.f32 %v1035_v1, %v57_v4 }
  0x1f   :  { %155 = vadd.xlane.f32.xlu1 %v154_v19  ;;  %v127_v56 = vsel %vm102_vm0, %v78_v52, 0.0  ;;  %v178_v61 = vsel %vm102_vm0, %v95_v57, 0.0  ;;  %v175_v62 = vsel %vm102_vm0, %v94_v58, 0.0  ;;  %v96_v13 = vmul.f32 %v1035_v1, %v56_v7 }
  0x20   :  { %152 = vadd.xlane.f32.xlu0 %v151_v20  ;;  %v136_v8 = vsel %vm102_vm0, %v81_v63, 0.0  ;;  %v133_v11 = vsel %vm102_vm0, %v80_v3, 0.0  ;;  %v184_v16 = vsel %vm102_vm0, %v97_v12, 0.0  ;;  %v83_v20 = vmul.f32 %v1035_v1, %v1147_v14 }
  0x21   :  { %v181_v19 = vsel %vm102_vm0, %v96_v13, 0.0  ;;  %v82_v21 = vmul.f32 %v1035_v1, %v1149_v15  ;;  %v99_v28 = vmul.f32 %v1035_v1, %v59_v22  ;;  %v84_v39 = vmul.f32 %v1035_v1, %v44_v33 }
  0x22   :  { %v101_v46 = vmul.f32 %v1035_v1, %v61_v40  ;;  %vm800_vm5 = vcmask 1045509   ;;  %vm802_vm6 = vcmask 1046534   ;;  %vm804_vm7 = vcmask 1047559  }
  0x23   :  { %161 = vadd.xlane.f32.xlu1 %v160_v25  ;;  %v58_v25 = vld [vmem:[#allocation3 + $0xe0] sm:$0xff]  ;;  %v139_v27 = vsel %vm102_vm0, %v82_v21, 0.0  ;;  %v190_v34 = vsel %vm102_vm0, %v99_v28, 0.0  ;;  %v145_v45 = vsel %vm102_vm0, %v84_v39, 0.0 }
  0x24   :  { %158 = vadd.xlane.f32.xlu0 %v157_v26  ;;  %v142_v26 = vsel %vm102_vm0, %v83_v20, 0.0 }
  0x27   :  { %119 = vadd.xlane.f32.xlu1 %v118_v31  ;;  %v98_v31 = vmul.f32 %v1035_v1, %v58_v25 }
  0x28   :  { %116 = vadd.xlane.f32.xlu0 %v115_v32  ;;  %v45_v32 = vld [vmem:[#allocation3 + $0x78] sm:$0xff] }
  0x2b   :  { %167 = vadd.xlane.f32.xlu1 %v166_v37  ;;  %v187_v37 = vsel %vm102_vm0, %v98_v31, 0.0 }
  0x2c   :  { %164 = vadd.xlane.f32.xlu0 %v163_v38  ;;  %v85_v38 = vmul.f32 %v1035_v1, %v45_v32 }
  0x2f   :  { %125 = vadd.xlane.f32.xlu1 %v124_v43  ;;  %v60_v43 = vld [vmem:[#allocation3 + $0xf0] sm:$0xff] }
  0x30   :  { %122 = vadd.xlane.f32.xlu0 %v121_v44  ;;  %v148_v44 = vsel %vm102_vm0, %v85_v38, 0.0 }
  0x33   :  { %173 = vadd.xlane.f32.xlu1 %v172_v49  ;;  %v100_v49 = vmul.f32 %v1035_v1, %v60_v43 }
  0x34   :  { %170 = vadd.xlane.f32.xlu0 %v169_v50  ;;  %v196_v50 = vsel %vm102_vm0, %v101_v46, 0.0 }
  0x35   :  { %v193_v51 = vsel %vm102_vm0, %v100_v49, 0.0 }
  0x37   :  { %131 = vadd.xlane.f32.xlu1 %v130_v55 }
  0x38   :  { %128 = vadd.xlane.f32.xlu0 %v127_v56  ;;  %v1174_v56 = vstv %s1502_s2  ;;  %s994_s2 = smov [#allocation6]  }
  0x39   :  { %s822_s28 = sshll.u32 %s994_s2, 4  ;;  %s823_s28 = int_to_ptr.vmem [resolvable:$true] %s822_s28 }
  0x3a   :  { %s965_s29 = scalar_lea.vmem %s823_s28, 256  ;;  %p970_p9 = scmp.lt.s32.totalorder %s823_s28, %s823_s28 }
  0x3b   :  { %179 = vadd.xlane.f32.xlu1 %v178_v61  ;;  %p966_p8 = scmp.ne.s32.totalorder %s823_s28, %s965_s29  ;;  %p971_p10 = scmp.lt.s32.totalorder %s965_s29, %s965_s29 }
  0x3c   :  { %176 = vadd.xlane.f32.xlu0 %v175_v62 }
  0x3d   :  { %p972_p11 = por %p971_p10, %p970_p9 }
  0x3f   :  { %137 = vadd.xlane.f32.xlu1 %v136_v8  ;;  %p973_p12 = pnand %p972_p11, %p966_p8 }
  0x40   :  { %134 = vadd.xlane.f32.xlu0 %v133_v11 }
  0x43   :  { %185 = vadd.xlane.f32.xlu1 %v184_v16 }
  0x44   :  { %182 = vadd.xlane.f32.xlu0 %v181_v19 }
  0x47   :  { %143 = vadd.xlane.f32.xlu1 %v142_v26 }
  0x48   :  { %140 = vadd.xlane.f32.xlu0 %v139_v27 }
  0x4b   :  { %191 = vadd.xlane.f32.xlu1 %v190_v34 }
  0x4c   :  { %188 = vadd.xlane.f32.xlu0 %v187_v37 }
  0x4f   :  { %149 = vadd.xlane.f32.xlu1 %v148_v44 }
  0x50   :  { %146 = vadd.xlane.f32.xlu0 %v145_v45 }
  0x53   :  { %197 = vadd.xlane.f32.xlu1 %v196_v50 }
  0x54   :  { %194 = vadd.xlane.f32.xlu0 %v193_v51 }
  0xa4   :  { %v111_v52 = vpop.xlane.xlu1 %110 }
  0xa5   :  { %v105_v55 = vpop.xlane.xlu0 %104  ;;  %v202_v61 = vadd.f32 %v1174_v56, %v111_v52 }
  0xa6   :  { %v200_v1 = vadd.f32 %v1174_v56, %v105_v55 }
  0xa8   :  { %v114_v57 = vpop.xlane.xlu1 %113 }
  0xa9   :  { %v108_v58 = vpop.xlane.xlu0 %107  ;;  %v203_v62 = vadd.f32 %v1174_v56, %v114_v57 }
  0xaa   :  { %v201_v63 = vadd.f32 %v1174_v56, %v108_v58 }
  0xab   :  { %v239_v3 = vmax.f32 %v202_v61, %v203_v62 }
  0xac   :  { %v232_v4 = vmax.f32 %v200_v1, %v201_v63  ;;  %v156_v7 = vpop.xlane.xlu1 %155 }
  0xad   :  { %v153_v8 = vpop.xlane.xlu0 %152  ;;  %v240_v11 = vrot.slane %v239_v3, 4  ;;  %v217_v13 = vadd.f32 %v1174_v56, %v156_v7 }
  0xae   :  { %v233_v12 = vrot.slane %v232_v4, 4  ;;  %v216_v16 = vadd.f32 %v1174_v56, %v153_v8 }
  0xaf   :  { %v241_v19 = vmax.f32 %v239_v3, %v240_v11 }
  0xb0   :  { %v234_v20 = vmax.f32 %v232_v4, %v233_v12  ;;  %v288_v21 = vmax.f32 %v216_v16, %v217_v13  ;;  %v162_v22 = vpop.xlane.xlu1 %161 }
  0xb1   :  { %v159_v25 = vpop.xlane.xlu0 %158  ;;  %v242_v26 = vrot.slane %v241_v19, 2  ;;  %v1183_v31 = vadd.f32 %v1174_v56, %v162_v22 }
  0xb2   :  { %v235_v27 = vrot.slane %v234_v20, 2  ;;  %v289_v28 = vrot.slane %v288_v21, 4  ;;  %v1186_v32 = vadd.f32 %v1174_v56, %v159_v25 }
  0xb3   :  { %v243_v33 = vmax.f32 %v241_v19, %v242_v26 }
  0xb4   :  { %v236_v34 = vmax.f32 %v234_v20, %v235_v27  ;;  %v290_v37 = vmax.f32 %v288_v21, %v289_v28  ;;  %v295_v38 = vmax.f32 %v1186_v32, %v1183_v31  ;;  %v120_v39 = vpop.xlane.xlu1 %119 }
  0xb5   :  { %v117_v40 = vpop.xlane.xlu0 %116  ;;  %v244_v43 = vrot.slane %v243_v33, 1  ;;  %v1191_v46 = vadd.f32 %v1174_v56, %v120_v39 }
  0xb6   :  { %v237_v44 = vrot.slane %v236_v34, 1  ;;  %v291_v45 = vrot.slane %v290_v37, 2  ;;  %v296_v49 = vrot.slane %v295_v38, 4  ;;  %v1194_v50 = vadd.f32 %v1174_v56, %v117_v40 }
  0xb7   :  { %v245_v51 = vmax.f32 %v243_v33, %v244_v43 }
  0xb8   :  { %v238_v52 = vmax.f32 %v236_v34, %v237_v44  ;;  %v292_v55 = vmax.f32 %v290_v37, %v291_v45  ;;  %v297_v57 = vmax.f32 %v295_v38, %v296_v49  ;;  %v246_v58 = vmax.f32 %v1194_v50, %v1191_v46  ;;  %v168_v3 = vpop.xlane.xlu1 %167 }
  0xb9   :  { %v165_v4 = vpop.xlane.xlu0 %164  ;;  %v346_v7 = vsub.f32 %v202_v61, %v245_v51  ;;  %v347_v8 = vsub.f32 %v203_v62, %v245_v51  ;;  %v1199_v22 = vadd.f32 %v1174_v56, %v168_v3 }
  0xba   :  { %v344_v11 = vsub.f32 %v200_v1, %v238_v52  ;;  %v345_v12 = vsub.f32 %v201_v63, %v238_v52  ;;  %v293_v19 = vrot.slane %v292_v55, 1  ;;  %v298_v20 = vrot.slane %v297_v57, 2 }
  0xbb   :  { %v247_v21 = vrot.slane %v246_v58, 4  ;;  %v380_v25 = vmul.f32 1.442695, %v346_v7  ;;  %v382_v26 = vmul.f32 1.442695, %v347_v8  ;;  %v1202_v28 = vadd.f32 %v1174_v56, %v165_v4 }
  0xbc   :  { %v376_v27 = vmul.f32 1.442695, %v344_v11  ;;  %v378_v33 = vmul.f32 1.442695, %v345_v12  ;;  %v294_v34 = vmax.f32 %v292_v55, %v293_v19  ;;  %v299_v37 = vmax.f32 %v297_v57, %v298_v20  ;;  %v126_v40 = vpop.xlane.xlu1 %125 }
  0xbd   :  { %v248_v38 = vmax.f32 %v246_v58, %v247_v21  ;;  %839 = vpow2.f32 %v380_v25  ;;  %v302_v61 = vmax.f32 %v1202_v28, %v1199_v22  ;;  %v123_v43 = vpop.xlane.xlu0 %122  ;;  %v1207_v55 = vadd.f32 %v1174_v56, %v126_v40 }
  0xbe   :  { %841 = vpow2.f32 %v382_v26  ;;  %v360_v1 = vsub.f32 %v216_v16, %v294_v34  ;;  %v361_v62 = vsub.f32 %v217_v13, %v294_v34  ;;  %v300_v63 = vrot.slane %v299_v37, 1 }
  0xbf   :  { %843 = vpow2.f32 %v376_v27  ;;  %v249_v39 = vrot.slane %v248_v38, 2  ;;  %v303_v51 = vrot.slane %v302_v61, 4  ;;  %v1210_v57 = vadd.f32 %v1174_v56, %v123_v43 }
  0xc0   :  { %845 = vpow2.f32 %v378_v33  ;;  %v408_v44 = vmul.f32 1.442695, %v360_v1  ;;  %v410_v45 = vmul.f32 1.442695, %v361_v62  ;;  %v301_v52 = vmax.f32 %v299_v37, %v300_v63 }
  0xc1   :  { %v250_v49 = vmax.f32 %v248_v38, %v249_v39  ;;  %v304_v16 = vmax.f32 %v302_v61, %v303_v51  ;;  %v253_v4 = vmax.f32 %v1210_v57, %v1207_v55 }
  0xc2   :  { %847 = vpow2.f32 %v408_v44  ;;  %v362_v58 = vsub.f32 %v1186_v32, %v301_v52  ;;  %v363_v3 = vsub.f32 %v1183_v31, %v301_v52  ;;  %v174_v32 = vpop.xlane.xlu1 %173 }
  0xc3   :  { %849 = vpow2.f32 %v410_v45  ;;  %v251_v13 = vrot.slane %v250_v49, 1  ;;  %v305_v25 = vrot.slane %v304_v16, 2  ;;  %v254_v34 = vrot.slane %v253_v4, 4 }
  0xc4   :  { %v412_v27 = vmul.f32 1.442695, %v362_v58  ;;  %v414_v33 = vmul.f32 1.442695, %v363_v3  ;;  %v1224_v39 = vadd.f32 %v1174_v56, %v174_v32 }
  0xc5   :  { %v252_v21 = vmax.f32 %v250_v49, %v251_v13  ;;  %v306_v63 = vmax.f32 %v304_v16, %v305_v25  ;;  %v255_v51 = vmax.f32 %v253_v4, %v254_v34 }
  0xc6   :  { %851 = vpow2.f32 %v412_v27 }
  0xc7   :  { %v840_v7 = vpop.eup %839  ;;  %v349_v44 = vsub.f32 %v1191_v46, %v252_v21  ;;  %853 = vpow2.f32 %v414_v33  ;;  %v307_v58 = vrot.slane %v306_v63, 1 }
  0xc8   :  { %v842_v8 = vpop.eup %841  ;;  %v554_v11 = vmul.f32 %v840_v7, %v1030_v0  ;;  %v171_v0 = vpop.xlane.xlu0 %170 }
  0xc9   :  { %v844_v12 = vpop.eup %843  ;;  %v447_v19 = vadd.f32 %v842_v8, %v840_v7  ;;  %v555_v20 = vmul.f32 %v842_v8, %v1043_v5  ;;  %v348_v5 = vsub.f32 %v1194_v50, %v252_v21  ;;  %v1228_v45 = vadd.f32 %v1174_v56, %v171_v0 }
  0xca   :  { %v846_v26 = vpop.eup %845  ;;  %v593_v31 = vsel %vm102_vm0, %v554_v11, 0.0  ;;  %v552_v38 = vmul.f32 %v844_v12, %v1037_v2  ;;  %v386_v8 = vmul.f32 1.442695, %v349_v44  ;;  %v132_v11 = vpop.xlane.xlu1 %131 }
  0xcb   :  { %v594_v37 = vsel %vm102_vm0, %v555_v20, 0.0  ;;  %v553_v61 = vmul.f32 %v846_v26, %v1045_v6  ;;  %v448_v1 = vrot.slane %v447_v19, 4  ;;  %v440_v62 = vadd.f32 %v846_v26, %v844_v12 }
  0xcc   :  { %v848_v40 = vpop.eup %847  ;;  %v595_v43 = vadd.f32 %v594_v37, %v593_v31  ;;  %v584_v6 = vsel %vm102_vm0, %v552_v38, 0.0  ;;  %v384_v16 = vmul.f32 1.442695, %v348_v5  ;;  %v256_v20 = vrot.slane %v255_v51, 2  ;;  %v129_v4 = vpop.xlane.xlu0 %128 }
  0xcd   :  { %v850_v2 = vpop.eup %849  ;;  %v585_v49 = vsel %vm102_vm0, %v553_v61, 0.0  ;;  %v449_v50 = vadd.f32 %v448_v1, %v447_v19  ;;  %v441_v52 = vrot.slane %v440_v62, 4  ;;  %v568_v13 = vmul.f32 %v848_v40, %v1053_v10 }
  0xce   :  { %v596_v3 = vrot.slane %v595_v43, 4  ;;  %v586_v7 = vadd.f32 %v585_v49, %v584_v6  ;;  %v569_v46 = vmul.f32 %v850_v2, %v1051_v9  ;;  %v496_v12 = vadd.f32 %v850_v2, %v848_v40 }
  0xcf   :  { %v309_v21 = vmax.f32 %v1228_v45, %v1224_v39  ;;  %v450_v25 = vrot.slane %v449_v50, 2  ;;  %v442_v26 = vadd.f32 %v441_v52, %v440_v62  ;;  %v656_v19 = vsel %vm102_vm0, %v568_v13, 0.0 }
  0xd0   :  { %855 = vpow2.f32 %v384_v16  ;;  %v308_v10 = vmax.f32 %v306_v63, %v307_v58  ;;  %v1238_v27 = vadd.f32 %v1174_v56, %v132_v11  ;;  %v597_v33 = vadd.f32 %v596_v3, %v595_v43  ;;  %v852_v61 = vpop.eup %851  ;;  %v180_v58 = vpop.xlane.xlu1 %179 }
  0xd1   :  { %v587_v34 = vrot.slane %v586_v7, 4  ;;  %v657_v9 = vsel %vm102_vm0, %v569_v46, 0.0  ;;  %857 = vpow2.f32 %v386_v8  ;;  %v497_v32 = vrot.slane %v496_v12, 4  ;;  %v854_v62 = vpop.eup %853 }
  0xd2   :  { %v257_v31 = vmax.f32 %v255_v51, %v256_v20  ;;  %v310_v37 = vrot.slane %v309_v21, 4  ;;  %v1242_v38 = vadd.f32 %v1174_v56, %v129_v4  ;;  %v451_v0 = vadd.f32 %v450_v25, %v449_v50 }
  0xd3   :  { %v443_v1 = vrot.slane %v442_v26, 2  ;;  %v658_v5 = vadd.f32 %v657_v9, %v656_v19  ;;  %v364_v63 = vsub.f32 %v1202_v28, %v308_v10  ;;  %v598_v40 = vrot.slane %v597_v33, 2 }
  0xd4   :  { %v588_v44 = vadd.f32 %v587_v34, %v586_v7  ;;  %v498_v43 = vadd.f32 %v497_v32, %v496_v12  ;;  %v258_v2 = vrot.slane %v257_v31, 1  ;;  %v311_v6 = vmax.f32 %v309_v21, %v310_v37  ;;  %v177_v12 = vpop.xlane.xlu0 %176 }
  0xd5   :  { %v260_v49 = vmax.f32 %v1242_v38, %v1238_v27  ;;  %v452_v51 = vrot.slane %v451_v0, 1  ;;  %v444_v52 = vadd.f32 %v443_v1, %v442_v26  ;;  %v503_v13 = vadd.f32 %v854_v62, %v852_v61 }
  0xd6   :  { %v365_v16 = vsub.f32 %v1199_v22, %v308_v10  ;;  %v659_v50 = vrot.slane %v658_v5, 4  ;;  %v570_v3 = vmul.f32 %v852_v61, %v1065_v18  ;;  %v416_v46 = vmul.f32 1.442695, %v364_v63 }
  0xd7   :  { %v1249_v8 = vadd.f32 %v598_v40, %v597_v33  ;;  %v589_v28 = vrot.slane %v588_v44, 2  ;;  %v571_v7 = vmul.f32 %v854_v62, %v1063_v17  ;;  %v499_v21 = vrot.slane %v498_v43, 2 }
  0xd8   :  { %v418_v11 = vmul.f32 1.442695, %v365_v16  ;;  %859 = vpow2.f32 %v416_v46  ;;  %v259_v25 = vmax.f32 %v257_v31, %v258_v2  ;;  %v312_v26 = vrot.slane %v311_v6, 2  ;;  %v138_v31 = vpop.xlane.xlu1 %137 }
  0xd9   :  { %v453_v19 = vadd.f32 %v452_v51, %v451_v0  ;;  %v445_v22 = vrot.slane %v444_v52, 1  ;;  %v504_v10 = vrot.slane %v503_v13, 4  ;;  %v261_v34 = vrot.slane %v260_v49, 4  ;;  %v135_v51 = vpop.xlane.xlu0 %134 }
  0xda   :  { %v856_v20 = vpop.eup %855  ;;  %v1252_v9 = vadd.f32 %v659_v50, %v658_v5  ;;  %861 = vpow2.f32 %v418_v11  ;;  %v350_v18 = vsub.f32 %v1210_v57, %v259_v25  ;;  %v351_v33 = vsub.f32 %v1207_v55, %v259_v25 }
  0xdb   :  { %v858_v4 = vpop.eup %857  ;;  %v665_v17 = vsel %vm102_vm0, %v570_v3, 0.0  ;;  %v666_v32 = vsel %vm102_vm0, %v571_v7, 0.0  ;;  %v313_v37 = vmax.f32 %v311_v6, %v312_v26  ;;  %v262_v61 = vmax.f32 %v260_v49, %v261_v34 }
  0xdc   :  { %v454_v1 = vadd.f32 %v858_v4, %v856_v20  ;;  %v388_v62 = vmul.f32 1.442695, %v350_v18  ;;  %v390_v0 = vmul.f32 1.442695, %v351_v33  ;;  %v1259_v63 = vadd.f32 %v1174_v56, %v180_v58 }
  0xdd   :  { %v600_v5 = vrot.slane %v1249_v8, 1  ;;  %v505_v40 = vadd.f32 %v504_v10, %v503_v13  ;;  %v314_v2 = vrot.slane %v313_v37, 1  ;;  %v263_v57 = vrot.slane %v262_v61, 2  ;;  %v186_v10 = vpop.xlane.xlu1 %185 }
  0xde   :  { %v667_v55 = vadd.f32 %v666_v32, %v665_v17  ;;  %863 = vpow2.f32 %v388_v62  ;;  %v1263_v16 = vadd.f32 %v1174_v56, %v177_v12  ;;  %v1266_v6 = vadd.f32 %v1174_v56, %v138_v31 }
  0xdf   :  { %v556_v49 = vmul.f32 %v856_v20, %v1075_v24  ;;  %v557_v50 = vmul.f32 %v858_v4, %v1073_v23  ;;  %865 = vpow2.f32 %v390_v0  ;;  %v315_v58 = vmax.f32 %v313_v37, %v314_v2 }
  0xe0   :  { %v455_v3 = vrot.slane %v454_v1, 4  ;;  %v264_v46 = vmax.f32 %v262_v61, %v263_v57  ;;  %v316_v13 = vmax.f32 %v1263_v16, %v1259_v63  ;;  %v1273_v7 = vadd.f32 %v1174_v56, %v135_v51 }
  0xe1   :  { %867 = vrcp.f32 %v453_v19  ;;  %v1275_v11 = vadd.f32 %v445_v22, %v444_v52  ;;  %v1277_v12 = vadd.f32 %v589_v28, %v588_v44  ;;  %v1279_v25 = vadd.f32 %v499_v21, %v498_v43  ;;  %v183_v19 = vpop.xlane.xlu0 %182 }
  0xe2   :  { %v860_v24 = vpop.eup %859  ;;  %v366_v23 = vsub.f32 %v1228_v45, %v315_v58  ;;  %v265_v20 = vrot.slane %v264_v46, 1  ;;  %v317_v26 = vrot.slane %v316_v13, 4  ;;  %v267_v4 = vmax.f32 %v1273_v7, %v1266_v6 }
  0xe3   :  { %v506_v34 = vrot.slane %v505_v40, 2  ;;  %v668_v18 = vrot.slane %v667_v55, 4  ;;  %v602_v33 = vsel %vm102_vm0, %v556_v49, 0.0  ;;  %v572_v52 = vmul.f32 %v860_v24, %v1085_v30 }
  0xe4   :  { %v862_v44 = vpop.eup %861  ;;  %v456_v28 = vadd.f32 %v455_v3, %v454_v1  ;;  %v603_v43 = vsel %vm102_vm0, %v557_v50, 0.0  ;;  %v318_v21 = vmax.f32 %v316_v13, %v317_v26  ;;  %v268_v22 = vrot.slane %v267_v4, 4 }
  0xe5   :  { %v510_v45 = vadd.f32 %v862_v44, %v860_v24  ;;  %v573_v17 = vmul.f32 %v862_v44, %v1083_v29  ;;  %v367_v32 = vsub.f32 %v1224_v39, %v315_v58  ;;  %v1290_v37 = vadd.f32 %v1174_v56, %v186_v10 }
  0xe6   :  { %v674_v61 = vsel %vm102_vm0, %v572_v52, 0.0  ;;  %v420_v31 = vmul.f32 1.442695, %v366_v23  ;;  %v266_v62 = vmax.f32 %v264_v46, %v265_v20  ;;  %v1294_v30 = vadd.f32 %v1174_v56, %v183_v19 }
  0xe7   :  { %v511_v1 = vrot.slane %v510_v45, 4  ;;  %v675_v0 = vsel %vm102_vm0, %v573_v17, 0.0  ;;  %v319_v2 = vrot.slane %v318_v21, 2  ;;  %v269_v57 = vmax.f32 %v267_v4, %v268_v22 }
  0xe8   :  { %v864_v51 = vpop.eup %863  ;;  %v1298_v29 = vadd.f32 %v600_v5, %v1249_v8  ;;  %v591_v39 = vrot.slane %v1277_v12, 1  ;;  %v661_v49 = vrot.slane %v1252_v9, 2  ;;  %v507_v50 = vadd.f32 %v506_v34, %v505_v40 }
  0xe9   :  { %v866_v58 = vpop.eup %865  ;;  %v604_v3 = vadd.f32 %v603_v43, %v602_v33  ;;  %v676_v46 = vadd.f32 %v675_v0, %v674_v61  ;;  %v422_v13 = vmul.f32 1.442695, %v367_v32  ;;  %v270_v24 = vrot.slane %v269_v57, 2 }
  0xea   :  { %v669_v23 = vadd.f32 %v668_v18, %v667_v55  ;;  %v512_v20 = vadd.f32 %v511_v1, %v510_v45  ;;  %v352_v26 = vsub.f32 %v1242_v38, %v266_v62  ;;  %v323_v4 = vmax.f32 %v1294_v30, %v1290_v37 }
  0xeb   :  { %v1305_v10 = vpop.eup %867  ;;  %v457_v8 = vrot.slane %v456_v28, 2  ;;  %869 = vpow2.f32 %v420_v31  ;;  %v353_v5 = vsub.f32 %v1238_v27, %v266_v62  ;;  %v320_v52 = vmax.f32 %v318_v21, %v319_v2  ;;  %v144_v21 = vpop.xlane.xlu1 %143 }
  0xec   :  { %v461_v40 = vadd.f32 %v866_v58, %v864_v51  ;;  %v558_v34 = vmul.f32 %v864_v51, %v1095_v36  ;;  %v559_v33 = vmul.f32 %v866_v58, %v1093_v35  ;;  %v271_v19 = vmax.f32 %v269_v57, %v270_v24  ;;  %v141_v31 = vpop.xlane.xlu0 %140 }
  0xed   :  { %v501_v55 = vrot.slane %v1279_v25, 1  ;;  %v605_v18 = vrot.slane %v604_v3, 4  ;;  %v677_v38 = vrot.slane %v676_v46, 4  ;;  %871 = vpow2.f32 %v422_v13 }
  0xee   :  { %v513_v44 = vrot.slane %v512_v20, 2  ;;  %v392_v43 = vmul.f32 1.442695, %v352_v26  ;;  %v272_v22 = vrot.slane %v271_v19, 1  ;;  %v324_v45 = vrot.slane %v323_v4, 4 }
  0xef   :  { %v508_v17 = vrot.slane %v507_v50, 1  ;;  %v670_v32 = vrot.slane %v669_v23, 2  ;;  %v458_v61 = vadd.f32 %v457_v8, %v456_v28  ;;  %v394_v27 = vmul.f32 1.442695, %v353_v5 }
  0xf0   :  { %v462_v62 = vrot.slane %v461_v40, 4  ;;  %v611_v36 = vsel %vm102_vm0, %v558_v34, 0.0  ;;  %v612_v35 = vsel %vm102_vm0, %v559_v33, 0.0  ;;  %v321_v1 = vrot.slane %v320_v52, 1 }
  0xf1   :  { %873 = vrcp.f32 %v1275_v11  ;;  %v502_v0 = vadd.f32 %v501_v55, %v1279_v25  ;;  %v606_v2 = vadd.f32 %v605_v18, %v604_v3  ;;  %v678_v57 = vadd.f32 %v677_v38, %v676_v46 }
  0xf2   :  { %v514_v51 = vadd.f32 %v513_v44, %v512_v20  ;;  %875 = vpow2.f32 %v392_v43  ;;  %v273_v58 = vmax.f32 %v271_v19, %v272_v22  ;;  %v325_v13 = vmax.f32 %v323_v4, %v324_v45  ;;  %v192_v20 = vpop.xlane.xlu1 %191  ;;  %v189_v4 = vpop.xlane.xlu0 %188 }
  0xf3   :  { %v1316_v28 = vadd.f32 %v661_v49, %v1252_v9  ;;  %v509_v24 = vadd.f32 %v508_v17, %v507_v50  ;;  %v613_v26 = vadd.f32 %v612_v35, %v611_v36  ;;  %877 = vpow2.f32 %v394_v27 }
  0xf4   :  { %v1318_v8 = vadd.f32 %v670_v32, %v669_v23  ;;  %v459_v5 = vrot.slane %v458_v61, 1  ;;  %v463_v34 = vadd.f32 %v462_v62, %v461_v40  ;;  %v322_v33 = vmax.f32 %v320_v52, %v321_v1 }
  0xf5   :  { %v870_v11 = vpop.eup %869  ;;  %879 = vrcp.f32 %v502_v0  ;;  %v607_v25 = vrot.slane %v606_v2, 2  ;;  %v679_v3 = vrot.slane %v678_v57, 2  ;;  %v1321_v46 = vadd.f32 %v1174_v56, %v144_v21 }
  0xf6   :  { %v515_v19 = vrot.slane %v514_v51, 1  ;;  %v354_v9 = vsub.f32 %v1273_v7, %v273_v58  ;;  %v326_v49 = vrot.slane %v325_v13, 2  ;;  %v1325_v50 = vadd.f32 %v1174_v56, %v141_v31  ;;  %v150_v62 = vpop.xlane.xlu1 %149  ;;  %v147_v36 = vpop.xlane.xlu0 %146 }
  0xf7   :  { %v872_v23 = vpop.eup %871  ;;  %v1330_v52 = vadd.f32 %v591_v39, %v1277_v12  ;;  %881 = vrcp.f32 %v509_v24  ;;  %v614_v40 = vrot.slane %v613_v26, 4  ;;  %v355_v55 = vsub.f32 %v1266_v6, %v273_v58 }
  0xf8   :  { %v672_v18 = vrot.slane %v1318_v8, 1  ;;  %v460_v38 = vadd.f32 %v459_v5, %v458_v61  ;;  %v464_v44 = vrot.slane %v463_v34, 2  ;;  %v368_v7 = vsub.f32 %v1263_v16, %v322_v33 }
  0xf9   :  { %v1335_v43 = vadd.f32 %v607_v25, %v606_v2  ;;  %v1337_v22 = vadd.f32 %v679_v3, %v678_v57  ;;  %v574_v45 = vmul.f32 %v870_v11, %v1105_v42  ;;  %v369_v17 = vsub.f32 %v1259_v63, %v322_v33 }
  0xfa   :  { %v516_v12 = vadd.f32 %v515_v19, %v514_v51  ;;  %v396_v39 = vmul.f32 1.442695, %v354_v9  ;;  %v327_v32 = vmax.f32 %v325_v13, %v326_v49  ;;  %v274_v6 = vmax.f32 %v1325_v50, %v1321_v46 }
  0xfb   :  { %v1343_v27 = vpop.eup %873  ;;  %v615_v61 = vadd.f32 %v614_v40, %v613_v26  ;;  %v517_v21 = vadd.f32 %v872_v23, %v870_v11  ;;  %v575_v16 = vmul.f32 %v872_v23, %v1103_v41  ;;  %v398_v31 = vmul.f32 1.442695, %v355_v55 }
  0xfc   :  { %v876_v35 = vpop.eup %875  ;;  %v465_v1 = vadd.f32 %v464_v44, %v463_v34  ;;  %v424_v42 = vmul.f32 1.442695, %v368_v7  ;;  %v328_v0 = vrot.slane %v327_v32, 1  ;;  %v1347_v63 = vadd.f32 %v1174_v56, %v192_v20 }
  0xfd   :  { %v878_v2 = vpop.eup %877  ;;  %v683_v57 = vsel %vm102_vm0, %v574_v45, 0.0  ;;  %v426_v51 = vmul.f32 1.442695, %v369_v17  ;;  %v275_v58 = vrot.slane %v274_v6, 4  ;;  %v1351_v13 = vadd.f32 %v1174_v56, %v189_v4 }
  0xfe   :  { %883 = vpow2.f32 %v396_v39  ;;  %v329_v41 = vmax.f32 %v327_v32, %v328_v0  ;;  %v1354_v24 = vadd.f32 %v1174_v56, %v150_v62  ;;  %v1357_v26 = vadd.f32 %v1174_v56, %v147_v36 }
  0xff   :  { %v1359_v5 = vpop.eup %879  ;;  %v518_v34 = vrot.slane %v517_v21, 4  ;;  %v684_v33 = vsel %vm102_vm0, %v575_v16, 0.0  ;;  %885 = vpow2.f32 %v398_v31  ;;  %v276_v11 = vmax.f32 %v274_v6, %v275_v58 }
 0x100   :  { %v468_v25 = vadd.f32 %v878_v2, %v876_v35  ;;  %887 = vpow2.f32 %v424_v42  ;;  %v370_v3 = vsub.f32 %v1294_v30, %v329_v41  ;;  %v330_v20 = vmax.f32 %v1351_v13, %v1347_v63 }
 0x101   :  { %v1365_v4 = vpop.eup %881  ;;  %889 = vpow2.f32 %v426_v51  ;;  %v371_v19 = vsub.f32 %v1290_v37, %v329_v41  ;;  %v277_v9 = vrot.slane %v276_v11, 2  ;;  %v281_v49 = vmax.f32 %v1357_v26, %v1354_v24 }
 0x102   :  { %v609_v23 = vrot.slane %v1335_v43, 1  ;;  %v466_v40 = vrot.slane %v465_v1, 1  ;;  %v616_v55 = vrot.slane %v615_v61, 2  ;;  %v685_v44 = vadd.f32 %v684_v33, %v683_v57  ;;  %v198_v57 = vpop.xlane.xlu1 %197 }
 0x103   :  { %v519_v7 = vadd.f32 %v518_v34, %v517_v21  ;;  %v278_v45 = vmax.f32 %v276_v11, %v277_v9  ;;  %v331_v30 = vrot.slane %v330_v20, 4  ;;  %v282_v17 = vrot.slane %v281_v49, 4  ;;  %v195_v21 = vpop.xlane.xlu0 %194 }
 0x104   :  { %891 = vrcp.f32 %v460_v38  ;;  %v681_v39 = vrot.slane %v1337_v22, 1  ;;  %v469_v32 = vrot.slane %v468_v25, 4  ;;  %v428_v6 = vmul.f32 1.442695, %v370_v3 }
 0x105   :  { %893 = vrcp.f32 %v516_v12  ;;  %v430_v37 = vmul.f32 1.442695, %v371_v19  ;;  %v279_v16 = vrot.slane %v278_v45, 1  ;;  %v332_v31 = vmax.f32 %v330_v20, %v331_v30 }
 0x106   :  { %v1372_v62 = vadd.f32 %v616_v55, %v615_v61  ;;  %v686_v36 = vrot.slane %v685_v44, 4  ;;  %v560_v42 = vmul.f32 %v876_v35, %v1115_v48  ;;  %v283_v0 = vmax.f32 %v281_v49, %v282_v17 }
 0x107   :  { %v1375_v51 = vadd.f32 %v466_v40, %v465_v1  ;;  %v520_v58 = vrot.slane %v519_v7, 2  ;;  %v561_v38 = vmul.f32 %v878_v2, %v1113_v47  ;;  %v280_v41 = vmax.f32 %v278_v45, %v279_v16 }
 0x108   :  { %v884_v34 = vpop.eup %883  ;;  %v470_v33 = vadd.f32 %v469_v32, %v468_v25  ;;  %895 = vpow2.f32 %v428_v6  ;;  %v333_v12 = vrot.slane %v332_v31, 2  ;;  %v284_v11 = vrot.slane %v283_v0, 2 }
 0x109   :  { %v886_v3 = vpop.eup %885  ;;  %897 = vpow2.f32 %v430_v37  ;;  %v356_v61 = vsub.f32 %v1325_v50, %v280_v41  ;;  %v1380_v48 = vadd.f32 %v1174_v56, %v198_v57  ;;  %v1383_v35 = vadd.f32 %v1174_v56, %v195_v21 }
 0x10a   :  { %v888_v1 = vpop.eup %887  ;;  %v1385_v20 = vadd.f32 %v686_v36, %v685_v44  ;;  %v620_v47 = vsel %vm102_vm0, %v560_v42, 0.0  ;;  %v357_v2 = vsub.f32 %v1321_v46, %v280_v41  ;;  %v334_v25 = vmax.f32 %v332_v31, %v333_v12 }
 0x10b   :  { %v890_v19 = vpop.eup %889  ;;  %v521_v9 = vadd.f32 %v520_v58, %v519_v7  ;;  %v621_v49 = vsel %vm102_vm0, %v561_v38, 0.0  ;;  %v400_v40 = vmul.f32 1.442695, %v356_v61  ;;  %v285_v50 = vmax.f32 %v283_v0, %v284_v11 }
 0x10c   :  { %v471_v55 = vrot.slane %v470_v33, 2  ;;  %v475_v45 = vadd.f32 %v886_v3, %v884_v34  ;;  %v402_v30 = vmul.f32 1.442695, %v357_v2  ;;  %v335_v17 = vrot.slane %v334_v25, 1 }
 0x10d   :  { %v576_v56 = vmul.f32 %v888_v1, %v1125_v54  ;;  %899 = vpow2.f32 %v400_v40  ;;  %v286_v44 = vrot.slane %v285_v50, 1  ;;  %v337_v32 = vmax.f32 %v1383_v35, %v1380_v48 }
 0x10e   :  { %v1393_v6 = vpop.eup %891  ;;  %v622_v46 = vadd.f32 %v621_v49, %v620_v47  ;;  %v524_v37 = vadd.f32 %v890_v19, %v888_v1  ;;  %901 = vpow2.f32 %v402_v30  ;;  %v336_v7 = vmax.f32 %v334_v25, %v335_v17 }
 0x10f   :  { %v1395_v16 = vpop.eup %893  ;;  %v577_v31 = vmul.f32 %v890_v19, %v1123_v53  ;;  %v562_v36 = vmul.f32 %v884_v34, %v1135_v60  ;;  %v563_v42 = vmul.f32 %v886_v3, %v1133_v59  ;;  %v287_v54 = vmax.f32 %v285_v50, %v286_v44 }
 0x110   :  { %v476_v0 = vrot.slane %v475_v45, 4  ;;  %v372_v57 = vsub.f32 %v1351_v13, %v336_v7  ;;  %v373_v21 = vsub.f32 %v1347_v63, %v336_v7  ;;  %v338_v58 = vrot.slane %v337_v32, 4 }
 0x111   :  { %v522_v38 = vrot.slane %v521_v9, 1  ;;  %v472_v41 = vadd.f32 %v471_v55, %v470_v33  ;;  %v692_v12 = vsel %vm102_vm0, %v576_v56, 0.0  ;;  %v358_v11 = vsub.f32 %v1357_v26, %v287_v54 }
 0x112   :  { %v896_v61 = vpop.eup %895  ;;  %v525_v1 = vrot.slane %v524_v37, 4  ;;  %v432_v53 = vmul.f32 1.442695, %v372_v57  ;;  %v434_v47 = vmul.f32 1.442695, %v373_v21  ;;  %v359_v60 = vsub.f32 %v1354_v24, %v287_v54 }
 0x113   :  { %v898_v59 = vpop.eup %897  ;;  %v693_v34 = vsel %vm102_vm0, %v577_v31, 0.0  ;;  %v629_v13 = vsel %vm102_vm0, %v562_v36, 0.0  ;;  %v630_v63 = vsel %vm102_vm0, %v563_v42, 0.0  ;;  %v404_v3 = vmul.f32 1.442695, %v358_v11  ;;  %v935_v11 = vld [vmem:[#allocation3 + $0xd0] sm:$0xff] }
 0x114   :  { %v477_v2 = vadd.f32 %v476_v0, %v475_v45  ;;  %903 = vpow2.f32 %v432_v53  ;;  %v406_v33 = vmul.f32 1.442695, %v359_v60  ;;  %v339_v25 = vmax.f32 %v337_v32, %v338_v58  ;;  %v936_v53 = vld [vmem:[#allocation3 + $0xd8] sm:$0xff] }
 0x115   :  { %905 = vrcp.f32 %v1375_v51  ;;  %v688_v26 = vrot.slane %v1385_v20, 2  ;;  %v473_v19 = vrot.slane %v472_v41, 1  ;;  %v623_v49 = vrot.slane %v622_v46, 4 }
 0x116   :  { %v694_v40 = vadd.f32 %v693_v34, %v692_v12  ;;  %v531_v24 = vadd.f32 %v898_v59, %v896_v61  ;;  %907 = vpow2.f32 %v434_v47  ;;  %v340_v50 = vrot.slane %v339_v25, 2 }
 0x117   :  { %v900_v55 = vpop.eup %899  ;;  %v523_v30 = vadd.f32 %v522_v38, %v521_v9  ;;  %v526_v17 = vadd.f32 %v525_v1, %v524_v37  ;;  %v631_v56 = vadd.f32 %v630_v63, %v629_v13  ;;  %909 = vpow2.f32 %v404_v3 }
 0x118   :  { %v902_v44 = vpop.eup %901  ;;  %v478_v45 = vrot.slane %v477_v2, 2  ;;  %v564_v7 = vmul.f32 %v900_v55, %v1149_v15  ;;  %911 = vpow2.f32 %v406_v33  ;;  %v341_v32 = vmax.f32 %v339_v25, %v340_v50 }
 0x119   :  { %v1412_v51 = vadd.f32 %v688_v26, %v1385_v20  ;;  %v1414_v31 = vadd.f32 %v623_v49, %v622_v46  ;;  %v482_v36 = vadd.f32 %v902_v44, %v900_v55  ;;  %v565_v42 = vmul.f32 %v902_v44, %v1147_v14 }
 0x11a   :  { %v474_v54 = vadd.f32 %v473_v19, %v472_v41  ;;  %v695_v0 = vrot.slane %v694_v40, 4  ;;  %v532_v9 = vrot.slane %v531_v24, 4  ;;  %v342_v37 = vrot.slane %v341_v32, 1 }
 0x11b   :  { %v527_v57 = vrot.slane %v526_v17, 2  ;;  %v483_v21 = vrot.slane %v482_v36, 4  ;;  %v638_v58 = vsel %vm102_vm0, %v564_v7, 0.0  ;;  %v639_v15 = vsel %vm102_vm0, %v565_v42, 0.0  ;;  %v937_v7 = vld [vmem:[#allocation3 + $0x70] sm:$0xff]  ;;  %v939_v42 = vld [vmem:[#allocation3 + $0xe8] sm:$0xff] }
 0x11c   :  { %913 = vrcp.f32 %v523_v30  ;;  %v479_v38 = vadd.f32 %v478_v45, %v477_v2  ;;  %v632_v12 = vrot.slane %v631_v56, 4  ;;  %v343_v20 = vmax.f32 %v341_v32, %v342_v37  ;;  %v938_v32 = vld [vmem:[#allocation3 + $0xe0] sm:$0xff] }
 0x11d   :  { %v625_v46 = vrot.slane %v1414_v31, 2  ;;  %v578_v1 = vmul.f32 %v935_v11, %v896_v61  ;;  %v579_v14 = vmul.f32 %v936_v53, %v898_v59  ;;  %v484_v41 = vadd.f32 %v483_v21, %v482_v36 }
 0x11e   :  { %v904_v47 = vpop.eup %903  ;;  %v533_v60 = vadd.f32 %v532_v9, %v531_v24  ;;  %v640_v34 = vadd.f32 %v639_v15, %v638_v58  ;;  %v374_v13 = vsub.f32 %v1383_v35, %v343_v20  ;;  %v375_v63 = vsub.f32 %v1380_v48, %v343_v20  ;;  %v940_v9 = vld [vmem:[#allocation3 + $0x78] sm:$0xff] }
 0x11f   :  { %v1422_v3 = vpop.eup %905  ;;  %915 = vrcp.f32 %v474_v54  ;;  %v528_v2 = vadd.f32 %v527_v57, %v526_v17  ;;  %v1424_v33 = vadd.f32 %v695_v0, %v694_v40  ;;  %v485_v25 = vrot.slane %v484_v41, 2 }
 0x120   :  { %v908_v26 = vpop.eup %907  ;;  %v480_v19 = vrot.slane %v479_v38, 1  ;;  %v633_v61 = vadd.f32 %v632_v12, %v631_v56  ;;  %v436_v49 = vmul.f32 1.442695, %v374_v13  ;;  %v438_v59 = vmul.f32 1.442695, %v375_v63 }
 0x121   :  { %v910_v50 = vpop.eup %909  ;;  %v701_v24 = vsel %vm102_vm0, %v578_v1, 0.0  ;;  %v702_v55 = vsel %vm102_vm0, %v579_v14, 0.0  ;;  %v486_v35 = vadd.f32 %v485_v25, %v484_v41  ;;  %v538_v30 = vadd.f32 %v908_v26, %v904_v47 }
 0x122   :  { %v912_v48 = vpop.eup %911  ;;  %v534_v44 = vrot.slane %v533_v60, 2  ;;  %v641_v45 = vrot.slane %v640_v34, 4  ;;  %v566_v17 = vmul.f32 %v937_v7, %v910_v50  ;;  %917 = vpow2.f32 %v436_v49 }
 0x123   :  { %v539_v40 = vrot.slane %v538_v30, 4  ;;  %v580_v36 = vmul.f32 %v938_v32, %v904_v47  ;;  %v581_v56 = vmul.f32 %v939_v42, %v908_v26  ;;  %v489_v54 = vadd.f32 %v912_v48, %v910_v50 }
 0x124   :  { %v487_v0 = vrot.slane %v486_v35, 1  ;;  %v567_v37 = vmul.f32 %v940_v9, %v912_v48  ;;  %v647_v57 = vsel %vm102_vm0, %v566_v17, 0.0  ;;  %919 = vpow2.f32 %v438_v59 }
 0x125   :  { %v529_v21 = vrot.slane %v528_v2, 1  ;;  %v703_v58 = vadd.f32 %v702_v55, %v701_v24  ;;  %v540_v15 = vadd.f32 %v539_v40, %v538_v30  ;;  %v490_v12 = vrot.slane %v489_v54, 4 }
 0x126   :  { %v1429_v20 = vpop.eup %913  ;;  %v697_v11 = vrot.slane %v1424_v33, 2  ;;  %v648_v1 = vsel %vm102_vm0, %v567_v37, 0.0  ;;  %v634_v53 = vrot.slane %v633_v61, 2  ;;  %v642_v14 = vadd.f32 %v641_v45, %v640_v34  ;;  %v942_v37 = vld [vmem:[#allocation3 + $0xf8] sm:$0xff] }
 0x127   :  { %v481_v41 = vadd.f32 %v480_v19, %v479_v38  ;;  %v535_v47 = vadd.f32 %v534_v44, %v533_v60  ;;  %v491_v13 = vadd.f32 %v490_v12, %v489_v54  ;;  %v649_v63 = vadd.f32 %v648_v1, %v647_v57 }
 0x128   :  { %v488_v25 = vadd.f32 %v487_v0, %v486_v35  ;;  %v541_v26 = vrot.slane %v540_v15, 2  ;;  %v710_v49 = vsel %vm102_vm0, %v580_v36, 0.0  ;;  %v711_v59 = vsel %vm102_vm0, %v581_v56, 0.0 }
 0x129   :  { %v1435_v50 = vpop.eup %915  ;;  %v530_v24 = vadd.f32 %v529_v21, %v528_v2  ;;  %v704_v55 = vrot.slane %v703_v58, 4  ;;  %v492_v30 = vrot.slane %v491_v13, 2  ;;  %v650_v48 = vrot.slane %v649_v63, 4 }
 0x12a   :  { %v610_v34 = vadd.f32 %v609_v23, %v1335_v43  ;;  %v626_v38 = vadd.f32 %v625_v46, %v1414_v31  ;;  %v635_v60 = vadd.f32 %v634_v53, %v633_v61  ;;  %v643_v19 = vrot.slane %v642_v14, 2  ;;  %v941_v43 = vld [vmem:[#allocation3 + $0xf0] sm:$0xff] }
 0x12b   :  { %921 = vrcp.f32 %v481_v41  ;;  %v712_v35 = vadd.f32 %v711_v59, %v710_v49  ;;  %v493_v44 = vadd.f32 %v492_v30, %v491_v13  ;;  %v651_v45 = vadd.f32 %v650_v48, %v649_v63 }
 0x12c   :  { %v918_v7 = vpop.eup %917  ;;  %v536_v17 = vrot.slane %v535_v47, 1  ;;  %923 = vrcp.f32 %v488_v25  ;;  %v542_v2 = vadd.f32 %v541_v26, %v540_v15  ;;  %v618_v40 = vrot.slane %v1372_v62, 1 }
 0x12d   :  { %925 = vrcp.f32 %v530_v24  ;;  %v705_v32 = vadd.f32 %v704_v55, %v703_v58  ;;  %v494_v36 = vrot.slane %v493_v44, 1  ;;  %v582_v23 = vmul.f32 %v941_v43, %v918_v7 }
 0x12e   :  { %v920_v42 = vpop.eup %919  ;;  %v627_v31 = vrot.slane %v626_v38, 1  ;;  %v636_v46 = vrot.slane %v635_v60, 1  ;;  %v644_v61 = vadd.f32 %v643_v19, %v642_v14  ;;  %v652_v56 = vrot.slane %v651_v45, 2 }
 0x12f   :  { %v713_v54 = vrot.slane %v712_v35, 4  ;;  %v495_v0 = vadd.f32 %v494_v36, %v493_v44  ;;  %v545_v9 = vadd.f32 %v920_v42, %v918_v7  ;;  %v583_v57 = vmul.f32 %v942_v37, %v920_v42 }
 0x130   :  { %v537_v21 = vadd.f32 %v536_v17, %v535_v47  ;;  %v543_v15 = vrot.slane %v542_v2, 1  ;;  %v719_v12 = vsel %vm102_vm0, %v582_v23, 0.0  ;;  %v619_v58 = vadd.f32 %v618_v40, %v1372_v62 }
 0x131   :  { %927 = vrcp.f32 %v495_v0  ;;  %v546_v1 = vrot.slane %v545_v9, 4  ;;  %v720_v53 = vsel %vm102_vm0, %v583_v57, 0.0  ;;  %v706_v41 = vrot.slane %v705_v32, 2 }
 0x132   :  { %v721_v13 = vadd.f32 %v720_v53, %v719_v12  ;;  %v628_v14 = vadd.f32 %v627_v31, %v626_v38  ;;  %v645_v63 = vrot.slane %v644_v61, 1  ;;  %v653_v25 = vadd.f32 %v652_v56, %v651_v45 }
 0x133   :  { %v547_v26 = vadd.f32 %v546_v1, %v545_v9  ;;  %v637_v49 = vadd.f32 %v636_v46, %v635_v60  ;;  %v698_v59 = vadd.f32 %v697_v11, %v1424_v33  ;;  %v714_v24 = vadd.f32 %v713_v54, %v712_v35 }
 0x134   :  { %v544_v47 = vadd.f32 %v543_v15, %v542_v2  ;;  %v722_v55 = vrot.slane %v721_v13, 4  ;;  %v760_v30 = vmul.f32 %v1343_v27, %v1330_v52  ;;  %v761_v62 = vmul.f32 %v1305_v10, %v1298_v29 }
 0x135   :  { %v922_v48 = vpop.eup %921  ;;  %929 = vrcp.f32 %v537_v21  ;;  %v548_v19 = vrot.slane %v547_v26, 2  ;;  %v707_v44 = vadd.f32 %v706_v41, %v705_v32  ;;  %v762_v38 = vmul.f32 %v1393_v6, %v610_v34 }
 0x136   :  { %v924_v45 = vpop.eup %923  ;;  %v646_v7 = vadd.f32 %v645_v63, %v644_v61  ;;  %v654_v60 = vrot.slane %v653_v25, 1  ;;  %v723_v17 = vadd.f32 %v722_v55, %v721_v13  ;;  %v763_v33 = vmul.f32 %v1422_v3, %v619_v58 }
 0x137   :  { %v926_v11 = vpop.eup %925  ;;  %v549_v35 = vadd.f32 %v548_v19, %v547_v26  ;;  %v715_v2 = vrot.slane %v714_v24, 2  ;;  %v764_v52 = vmul.f32 %v1435_v50, %v628_v14  ;;  %931 = vrcp.f32 %v544_v47 }
 0x138   :  { %v765_v29 = vmul.f32 %v922_v48, %v637_v49  ;;  %v793_v10 = vsel %vm792_vm1, %v761_v62, %v760_v30  ;;  %v766_v40 = vmul.f32 %v924_v45, %v646_v7  ;;  %v655_v34 = vadd.f32 %v654_v60, %v653_v25 }
 0x139   :  { %v550_v27 = vrot.slane %v549_v35, 1  ;;  %v795_v6 = vsel %vm794_vm2, %v762_v38, %v793_v10  ;;  %v724_v32 = vrot.slane %v723_v17, 2  ;;  %v716_v23 = vadd.f32 %v715_v2, %v714_v24 }
 0x13a   :  { %v797_v3 = vsel %vm796_vm3, %v763_v33, %v795_v6  ;;  %v663_v42 = vrot.slane %v1316_v28, 1  ;;  %v690_v31 = vrot.slane %v1412_v51, 1  ;;  %v699_v56 = vrot.slane %v698_v59, 1 }
 0x13b   :  { %v928_v36 = vpop.eup %927  ;;  %v551_v43 = vadd.f32 %v550_v27, %v549_v35  ;;  %v799_v50 = vsel %vm798_vm4, %v764_v52, %v797_v3  ;;  %v673_v0 = vadd.f32 %v672_v18, %v1318_v8  ;;  %v708_v9 = vrot.slane %v707_v44, 1 }
 0x13c   :  { %v767_v46 = vmul.f32 %v928_v36, %v655_v34  ;;  %v801_v61 = vsel %vm800_vm5, %v765_v29, %v799_v50  ;;  %v725_v37 = vadd.f32 %v724_v32, %v723_v17  ;;  %v682_v15 = vadd.f32 %v681_v39, %v1337_v22 }
 0x13d   :  { %933 = vrcp.f32 %v551_v43  ;;  %v803_v54 = vsel %vm802_vm6, %v766_v40, %v801_v61  ;;  %v717_v12 = vrot.slane %v716_v23, 1  ;;  %v664_v58 = vadd.f32 %v663_v42, %v1316_v28 }
 0x13e   :  { %v805_v57 = vsel %vm804_vm7, %v767_v46, %v803_v54  ;;  %v691_v1 = vadd.f32 %v690_v31, %v1412_v51  ;;  %v769_v53 = vmul.f32 %v1365_v4, %v673_v0  ;;  %v700_v41 = vadd.f32 %v699_v56, %v698_v59 }
 0x13f   :  { %v930_v21 = vpop.eup %929  ;;  %815 = vst.msk [vmem:[#allocation6] sm:$0xff] %vm102_vm0, %v805_v57  ;;  %v770_v8 = vmul.f32 %v1395_v16, %v682_v15  ;;  %v709_v13 = vadd.f32 %v708_v9, %v707_v44  ;;  %v726_v14 = vrot.slane %v725_v37, 1  ;;  %v768_v63 = vmul.f32 %v1359_v5, %v664_v58 }
 0x140   :  { %v771_v25 = vmul.f32 %v1429_v20, %v691_v1  ;;  %v718_v22 = vadd.f32 %v717_v12, %v716_v23  ;;  %v772_v39 = vmul.f32 %v926_v11, %v700_v41 }
 0x141   :  { %v932_v18 = vpop.eup %931  ;;  %v773_v26 = vmul.f32 %v930_v21, %v709_v13  ;;  %v806_v49 = vsel %vm792_vm1, %v769_v53, %v768_v63  ;;  %v727_v24 = vadd.f32 %v726_v14, %v725_v37 }
 0x142   :  { %v774_v28 = vmul.f32 %v932_v18, %v718_v22  ;;  %v807_v51 = vsel %vm794_vm2, %v770_v8, %v806_v49 }
 0x143   :  { %v808_v4 = vsel %vm796_vm3, %v771_v25, %v807_v51 }
 0x144   :  { %v809_v59 = vsel %vm798_vm4, %v772_v39, %v808_v4 }
 0x145   :  { %v810_v5 = vsel %vm800_vm5, %v773_v26, %v809_v59 }
 0x146   :  { %v811_v20 = vsel %vm802_vm6, %v774_v28, %v810_v5 }
 0x147   :  { %v934_v16 = vpop.eup %933 }
 0x148   :  { %v775_v47 = vmul.f32 %v934_v16, %v727_v24 }
 0x14a   :  { %v812_v55 = vsel %vm804_vm7, %v775_v47, %v811_v20 }
 0x14b   :  { %816 = vst.msk [vmem:[#allocation6 + $0x8] sm:$0xff] %vm102_vm0, %v812_v55 }
 0x14c   :  { %976 = shalt.err (!%p973_p12)
}
 0x14d   :  { %s977_s5 = scalar_lea.hbm %s1503_s3, 256 }
 0x14e   :  { %p978_p13 = scmp.ne.s32.totalorder %s1503_s3, %s977_s5  ;;  %p981_p0 = scmp.lt.u32.totalorder %s977_s5, %s1503_s3 }
 0x150   :  { %p983_p1 = pnand %p981_p0, %p978_p13 }
 0x152   :  { %986 = shalt.err (!%p983_p1)
}
 0x153   :  { %828 = dma.vmem_to_hbm [thread:$0]  %s823_s28, 256, %s1503_s3, [#allocation5], %s992_s22, %s992_s22, %s993_s23  }
 0x154   :  { %989 = dma.done.wait [#allocation5], 256  }
 0x155   :  { %990 = vsyncadd [#allocation5], 4294967040 }
 0x156   :  { %832 = vsyncpa [#allocation4], 1 }
 0x157   :  { %833 = vsyncpa [#allocation5], 1 }

</bundles_post_ra>
